<compile_context>
chip_gen: v6e
topology: v6e:2x2x1
jax: 0.10.0
libtpu: 0.0.40
codegen_flags: <defaults>
</compile_context>

<pallas_src>
import functools

import jax
import jax.numpy as jnp
from jax import lax
from jax.experimental import pallas as pl
from jax.experimental.pallas import tpu as pltpu


def _cln_kernel(x_ref, gain_ref, bias_ref, out_ref, carry_ref, *, eps):
    t = pl.program_id(1)

    # Reset the carried running totals at the start of each batch element
    # (time is the innermost grid axis and marked "arbitrary", so t == 0 marks
    # a new batch element).
    @pl.when(t == 0)
    def _():
        carry_ref[...] = jnp.zeros_like(carry_ref)

    x_nat = x_ref[0]                                   # (C, Tt), input dtype
    x32 = x_nat.astype(jnp.float32)                    # (C, Tt) f32 for stats
    C, Tt = x32.shape

    # Per-time-step channel sums, stacked so both scans share the lane scan:
    #   row 0 = sum_c x, row 1 = sum_c x^2.
    stats = jnp.concatenate(
        [jnp.sum(x32, axis=0, keepdims=True),
         jnp.sum(x32 * x32, axis=0, keepdims=True)],
        axis=0)                                        # (2, Tt)

    # Inclusive cumsum along the time (lane) axis: Hillis-Steele scan using
    # pltpu.roll (XLU) + lane mask (VPU). ceil(log2(Tt)) unrolled steps; no MXU.
    lane_i = lax.broadcasted_iota(jnp.int32, (1, Tt), 1)
    shift = 1
    while shift < Tt:
        rolled = pltpu.roll(stats, shift=shift, axis=1)
        stats = stats + jnp.where(lane_i >= shift, rolled, 0.0)
        shift *= 2

    # Add the totals carried from earlier time tiles of this batch element;
    # the last lane of the inclusive scan is the carry for the next tile.
    stats = stats + carry_ref[...]                     # (2, Tt) + (2, 1)
    carry_ref[...] = stats[:, Tt - 1:Tt]

    cum_sum = stats[0:1, :]                            # (1, Tt)
    cum_pow = stats[1:2, :]                            # (1, Tt)

    # entry_cnt = (global_time_index + 1) * C, offset by the tile start.
    cnt = (lane_i + 1 + t * Tt).astype(jnp.float32) * jnp.float32(C)
    inv_cnt = 1.0 / cnt

    cum_mean = cum_sum * inv_cnt
    cum_var = (cum_pow - 2.0 * cum_mean * cum_sum) * inv_cnt + cum_mean * cum_mean
    rstd = lax.rsqrt(cum_var + eps)                    # (1, Tt) -> EUP

    g = gain_ref[...]                                  # (C, 1) f32
    b = bias_ref[...]                                  # (C, 1) f32

    if out_ref.dtype == jnp.float32:
        out_ref[0] = ((x32 - cum_mean) * rstd) * g + b
    else:
        # Stats stay in f32; apply in the narrow input dtype (bf16 VPU on
        # v6e/v7x) to halve vreg pressure and store traffic.
        cdt = out_ref.dtype
        y = (x_nat - cum_mean.astype(cdt)) * rstd.astype(cdt)
        out_ref[0] = y * g.astype(cdt) + b.astype(cdt)


def _round_up(x, m):
    return -(-x // m) * m


def _vmem_capacity_bytes():
    try:
        return int(pltpu.get_tpu_info().vmem_capacity_bytes)
    except Exception:
        return 64 * 1024 * 1024   # conservative fallback (v7x per-core VMEM)


def _vmem_budget(vmem_cap):
    # Leave headroom for Mosaic internal scratch; do not push the limit to
    # physical capacity (matters most on v5e when the limit is raised a lot).
    return min(int(vmem_cap * 0.85), vmem_cap - (16 << 20))


def _vmem_needed(C, tt, itemsize):
    block = C * tt * itemsize
    # in + out blocks (double-buffered) + ~3 f32 (C, Tt) elementwise temps
    # + params / carry scratch + fixed headroom.
    return 4 * block + 3 * C * tt * 4 + 4 * C * 4 + (8 << 20)


def _choose_time_tile(T, C, itemsize, vmem_cap):
    """Largest power-of-two time tile that fits the VMEM budget, does not
    over-pad a short signal, and respects a per-generation cap."""
    budget = _vmem_budget(vmem_cap)
    max_tt = 2048 if vmem_cap <= (64 << 20) else 4096   # v7x: 64 MiB / core
    t128 = _round_up(max(T, 1), 128)
    tt = 128
    for cand in (256, 512, 1024, 2048, 4096):
        if cand > max_tt:
            break
        if _vmem_needed(C, cand, itemsize) > budget:
            break
        if tt >= t128:    # one tile already covers the whole (padded) signal
            break
        tt = cand
    return tt


def cumulate_ln(x, gain, bias, eps=1e-8, *, time_tile=None):
    """x: (B, C, T); gain/bias: (1, C, 1). Returns (B, C, T)."""
    B, C, T = x.shape
    vmem_cap = _vmem_capacity_bytes()
    if time_tile is not None:
        Tt = int(time_tile)
        if Tt % 128:
            raise ValueError(f"time_tile={Tt} must be a multiple of 128")
    else:
        Tt = _choose_time_tile(T, C, x.dtype.itemsize, vmem_cap)

    # Pad time up to a tile multiple; padding is at the end so it never feeds
    # the cumulative statistics of real frames, and it is sliced off below.
    T_pad = _round_up(T, Tt)
    x_pad = x if T_pad == T else jnp.pad(x, ((0, 0), (0, 0), (0, T_pad - T)))
    n_t = T_pad // Tt

    gain2 = gain.reshape(C, 1).astype(jnp.float32)
    bias2 = bias.reshape(C, 1).astype(jnp.float32)

    vmem_limit = int(min(max(_vmem_needed(C, Tt, x.dtype.itemsize), 32 << 20),
                         _vmem_budget(vmem_cap)))

    kernel = functools.partial(_cln_kernel, eps=eps)

    out = pl.pallas_call(
        kernel,
        out_shape=jax.ShapeDtypeStruct((B, C, T_pad), x.dtype),
        grid_spec=pltpu.PrefetchScalarGridSpec(
            num_scalar_prefetch=0,
            grid=(B, n_t),
            in_specs=[
                pl.BlockSpec((1, C, Tt), lambda b, t: (b, 0, t)),
                pl.BlockSpec((C, 1), lambda b, t: (0, 0)),      # gain (resident)
                pl.BlockSpec((C, 1), lambda b, t: (0, 0)),      # bias (resident)
            ],
            out_specs=pl.BlockSpec((1, C, Tt), lambda b, t: (b, 0, t)),
            scratch_shapes=[
                pltpu.VMEM((2, 1), jnp.float32),   # carried (cum_sum, cum_pow)
            ],
        ),
        compiler_params=pltpu.CompilerParams(
            # TODO(synk): for B == 1 on v7x only one TensorCore is used; a
            # two-pass split (stats pass, then channel/time-parallel apply
            # pass) would engage both cores.
            dimension_semantics=("parallel", "arbitrary"),
            vmem_limit_bytes=vmem_limit,
        ),
    )(x_pad, gain2, bias2)

    return out if T_pad == T else out[:, :, :T]


def cumulate_ln_ref(x, gain, bias, eps=1e-8):
    """Pure-JAX reference mirroring the PyTorch forward."""
    B, C, T = x.shape
    step_sum = x.sum(axis=1)                 # (B, T)
    step_pow = (x ** 2).sum(axis=1)          # (B, T)
    cum_sum = jnp.cumsum(step_sum, axis=1)
    cum_pow = jnp.cumsum(step_pow, axis=1)
    entry_cnt = jnp.arange(C, C * (T + 1), C, dtype=x.dtype).reshape(1, T)
    cum_mean = cum_sum / entry_cnt
    cum_var = (cum_pow - 2 * cum_mean * cum_sum) / entry_cnt + cum_mean ** 2
    cum_std = jnp.sqrt(cum_var + eps)
    y = (x - cum_mean[:, None, :]) / cum_std[:, None, :]
    return y * gain + bias


if __name__ == "__main__":
    key = jax.random.PRNGKey(0)
    k1, k2, k3, k4, k5 = jax.random.split(key, 5)

    # Check 1: small shape matching the module's (batch, channels, time) layout,
    # module-default parameters (ones/zeros). Exercises the end-padding path
    # (T=16 -> one padded 128-lane tile).
    B, C, T = 2, 4, 16
    x = jax.random.normal(k1, (B, C, T), dtype=jnp.float32)
    gain = jnp.ones((1, C, 1), dtype=jnp.float32)
    bias = jnp.zeros((1, C, 1), dtype=jnp.float32)

    out = jax.block_until_ready(cumulate_ln(x, gain, bias))
    ref = cumulate_ln_ref(x, gain, bias)
    assert jnp.allclose(out, ref, atol=1e-5, rtol=1e-5), "mismatch (single tile)"

    # Check 2: exercises the time-tiled carried-scan path (2 time tiles of 128)
    # and non-trivial gain/bias.
    B2, C2, T2 = 2, 8, 256
    x2 = jax.random.normal(k2, (B2, C2, T2), dtype=jnp.float32)
    gain2 = 1.0 + 0.1 * jax.random.normal(k3, (1, C2, 1), dtype=jnp.float32)
    bias2 = 0.1 * jax.random.normal(k4, (1, C2, 1), dtype=jnp.float32)

    out2 = jax.block_until_ready(cumulate_ln(x2, gain2, bias2, time_tile=128))
    ref2 = cumulate_ln_ref(x2, gain2, bias2)
    assert jnp.allclose(out2, ref2, atol=1e-4, rtol=1e-4), "mismatch (tiled path)"

    # Check 3: T not a multiple of 128 with multiple tiles (pad + carry + slice).
    B3, C3, T3 = 1, 6, 200
    x3 = jax.random.normal(k5, (B3, C3, T3), dtype=jnp.float32)
    gain3 = jnp.ones((1, C3, 1), dtype=jnp.float32)
    bias3 = jnp.zeros((1, C3, 1), dtype=jnp.float32)

    out3 = jax.block_until_ready(cumulate_ln(x3, gain3, bias3, time_tile=128))
    ref3 = cumulate_ln_ref(x3, gain3, bias3)
    assert jnp.allclose(out3, ref3, atol=1e-4, rtol=1e-4), "mismatch (padded path)"

    print("KERNEL_OK")
</pallas_src>

<mosaic_0001>
module attributes {stable_mosaic.version = 11 : i64} {
  func.func @_cln_kernel(%arg0: i32, %arg1: i32, %arg2: memref<1x4x128xf32, #tpu.memory_space<vmem>>, %arg3: memref<4x1xf32, #tpu.memory_space<vmem>>, %arg4: memref<4x1xf32, #tpu.memory_space<vmem>>, %arg5: memref<1x4x128xf32, #tpu.memory_space<vmem>>, %arg6: memref<2x1xf32, #tpu.memory_space<vmem>>) attributes {dimension_semantics = [#tpu.dimension_semantics<parallel>, #tpu.dimension_semantics<arbitrary>], iteration_bounds = array<i64: 2, 1>, scalar_prefetch = 0 : i64, scratch_operands = 1 : i64, tpu.core_type = #tpu.core_type<tc>, window_params = [{transform_indices = @transform_0, window_bounds = array<i64: 1, 4, 128>}, {pipeline_mode = #tpu.pipeline_mode<synchronous>, transform_indices = @transform_1, window_bounds = array<i64: 4, 1>}, {pipeline_mode = #tpu.pipeline_mode<synchronous>, transform_indices = @transform_2, window_bounds = array<i64: 4, 1>}, {transform_indices = @transform_3, window_bounds = array<i64: 1, 4, 128>}]} {
    %c0_i32 = arith.constant 0 : i32
    %0 = arith.cmpi eq, %arg1, %c0_i32 : i32
    %1 = arith.extui %0 : i1 to i32
    %c0_i32_0 = arith.constant 0 : i32
    %2 = arith.cmpi ne, %1, %c0_i32_0 : i32
    scf.if %2 {
      %cst_34 = arith.constant 0.000000e+00 : f32
      %109 = vector.broadcast %cst_34 : f32 to vector<2x1xf32>
      %c0_35 = arith.constant 0 : index
      %c0_36 = arith.constant 0 : index
      %110 = vector.load %arg6[%c0_35, %c0_36] : memref<2x1xf32, #tpu.memory_space<vmem>>, vector<2x1xf32>
      tpu.vector_store %arg6[%c0_35, %c0_36], %109 {strides = array<i32>} : memref<2x1xf32, #tpu.memory_space<vmem>>, vector<2x1xf32>,
    } else {
    }
    %c0 = arith.constant 0 : index
    %c0_1 = arith.constant 0 : index
    %c0_2 = arith.constant 0 : index
    %3 = vector.load %arg2[%c0, %c0_1, %c0_2] : memref<1x4x128xf32, #tpu.memory_space<vmem>>, vector<1x4x128xf32>
    %4 = vector.shape_cast %3 : vector<1x4x128xf32> to vector<4x128xf32>
    %cst = arith.constant dense<0.000000e+00> : vector<128xf32>
    %5 = vector.multi_reduction <add>, %4, %cst [0] : vector<4x128xf32> to vector<128xf32>
    %6 = vector.shape_cast %5 : vector<128xf32> to vector<1x128xf32>
    %7 = arith.mulf %4, %4 : vector<4x128xf32>
    %cst_3 = arith.constant dense<0.000000e+00> : vector<128xf32>
    %8 = vector.multi_reduction <add>, %7, %cst_3 [0] : vector<4x128xf32> to vector<128xf32>
    %9 = vector.shape_cast %8 : vector<128xf32> to vector<1x128xf32>
    %10 = tpu.concatenate %6, %9 in 0 : vector<1x128xf32>, vector<1x128xf32> -> vector<2x128xf32>
    %11 = tpu.iota {dimensions = array<i32: 1>} : vector<1x128xi32>
    %c1_i32 = arith.constant 1 : i32
    %12 = tpu.dynamic_rotate %10 by %c1_i32 dim 1 : vector<2x128xf32>, i32 -> vector<2x128xf32>
    %c1_i32_4 = arith.constant 1 : i32
    %13 = vector.broadcast %c1_i32_4 : i32 to vector<1x128xi32>
    %14 = arith.cmpi sge, %11, %13 : vector<1x128xi32>
    %cst_5 = arith.constant 0.000000e+00 : f32
    %15 = vector.shape_cast %14 : vector<1x128xi1> to vector<1x128xi1>
    %16 = vector.broadcast %15 : vector<1x128xi1> to vector<2x128xi1>
    %17 = vector.broadcast %cst_5 : f32 to vector<2x128xf32>
    %18 = arith.select %16, %12, %17 : vector<2x128xi1>, vector<2x128xf32>
    %19 = arith.addf %10, %18 : vector<2x128xf32>
    %c2_i32 = arith.constant 2 : i32
    %20 = tpu.dynamic_rotate %19 by %c2_i32 dim 1 : vector<2x128xf32>, i32 -> vector<2x128xf32>
    %c2_i32_6 = arith.constant 2 : i32
    %21 = vector.broadcast %c2_i32_6 : i32 to vector<1x128xi32>
    %22 = arith.cmpi sge, %11, %21 : vector<1x128xi32>
    %cst_7 = arith.constant 0.000000e+00 : f32
    %23 = vector.shape_cast %22 : vector<1x128xi1> to vector<1x128xi1>
    %24 = vector.broadcast %23 : vector<1x128xi1> to vector<2x128xi1>
    %25 = vector.broadcast %cst_7 : f32 to vector<2x128xf32>
    %26 = arith.select %24, %20, %25 : vector<2x128xi1>, vector<2x128xf32>
    %27 = arith.addf %19, %26 : vector<2x128xf32>
    %c4_i32 = arith.constant 4 : i32
    %28 = tpu.dynamic_rotate %27 by %c4_i32 dim 1 : vector<2x128xf32>, i32 -> vector<2x128xf32>
    %c4_i32_8 = arith.constant 4 : i32
    %29 = vector.broadcast %c4_i32_8 : i32 to vector<1x128xi32>
    %30 = arith.cmpi sge, %11, %29 : vector<1x128xi32>
    %cst_9 = arith.constant 0.000000e+00 : f32
    %31 = vector.shape_cast %30 : vector<1x128xi1> to vector<1x128xi1>
    %32 = vector.broadcast %31 : vector<1x128xi1> to vector<2x128xi1>
    %33 = vector.broadcast %cst_9 : f32 to vector<2x128xf32>
    %34 = arith.select %32, %28, %33 : vector<2x128xi1>, vector<2x128xf32>
    %35 = arith.addf %27, %34 : vector<2x128xf32>
    %c8_i32 = arith.constant 8 : i32
    %36 = tpu.dynamic_rotate %35 by %c8_i32 dim 1 : vector<2x128xf32>, i32 -> vector<2x128xf32>
    %c8_i32_10 = arith.constant 8 : i32
    %37 = vector.broadcast %c8_i32_10 : i32 to vector<1x128xi32>
    %38 = arith.cmpi sge, %11, %37 : vector<1x128xi32>
    %cst_11 = arith.constant 0.000000e+00 : f32
    %39 = vector.shape_cast %38 : vector<1x128xi1> to vector<1x128xi1>
    %40 = vector.broadcast %39 : vector<1x128xi1> to vector<2x128xi1>
    %41 = vector.broadcast %cst_11 : f32 to vector<2x128xf32>
    %42 = arith.select %40, %36, %41 : vector<2x128xi1>, vector<2x128xf32>
    %43 = arith.addf %35, %42 : vector<2x128xf32>
    %c16_i32 = arith.constant 16 : i32
    %44 = tpu.dynamic_rotate %43 by %c16_i32 dim 1 : vector<2x128xf32>, i32 -> vector<2x128xf32>
    %c16_i32_12 = arith.constant 16 : i32
    %45 = vector.broadcast %c16_i32_12 : i32 to vector<1x128xi32>
    %46 = arith.cmpi sge, %11, %45 : vector<1x128xi32>
    %cst_13 = arith.constant 0.000000e+00 : f32
    %47 = vector.shape_cast %46 : vector<1x128xi1> to vector<1x128xi1>
    %48 = vector.broadcast %47 : vector<1x128xi1> to vector<2x128xi1>
    %49 = vector.broadcast %cst_13 : f32 to vector<2x128xf32>
    %50 = arith.select %48, %44, %49 : vector<2x128xi1>, vector<2x128xf32>
    %51 = arith.addf %43, %50 : vector<2x128xf32>
    %c32_i32 = arith.constant 32 : i32
    %52 = tpu.dynamic_rotate %51 by %c32_i32 dim 1 : vector<2x128xf32>, i32 -> vector<2x128xf32>
    %c32_i32_14 = arith.constant 32 : i32
    %53 = vector.broadcast %c32_i32_14 : i32 to vector<1x128xi32>
    %54 = arith.cmpi sge, %11, %53 : vector<1x128xi32>
    %cst_15 = arith.constant 0.000000e+00 : f32
    %55 = vector.shape_cast %54 : vector<1x128xi1> to vector<1x128xi1>
    %56 = vector.broadcast %55 : vector<1x128xi1> to vector<2x128xi1>
    %57 = vector.broadcast %cst_15 : f32 to vector<2x128xf32>
    %58 = arith.select %56, %52, %57 : vector<2x128xi1>, vector<2x128xf32>
    %59 = arith.addf %51, %58 : vector<2x128xf32>
    %c64_i32 = arith.constant 64 : i32
    %60 = tpu.dynamic_rotate %59 by %c64_i32 dim 1 : vector<2x128xf32>, i32 -> vector<2x128xf32>
    %c64_i32_16 = arith.constant 64 : i32
    %61 = vector.broadcast %c64_i32_16 : i32 to vector<1x128xi32>
    %62 = arith.cmpi sge, %11, %61 : vector<1x128xi32>
    %cst_17 = arith.constant 0.000000e+00 : f32
    %63 = vector.shape_cast %62 : vector<1x128xi1> to vector<1x128xi1>
    %64 = vector.broadcast %63 : vector<1x128xi1> to vector<2x128xi1>
    %65 = vector.broadcast %cst_17 : f32 to vector<2x128xf32>
    %66 = arith.select %64, %60, %65 : vector<2x128xi1>, vector<2x128xf32>
    %67 = arith.addf %59, %66 : vector<2x128xf32>
    %c0_18 = arith.constant 0 : index
    %c0_19 = arith.constant 0 : index
    %68 = vector.load %arg6[%c0_18, %c0_19] : memref<2x1xf32, #tpu.memory_space<vmem>>, vector<2x1xf32>
    %69 = vector.broadcast %68 : vector<2x1xf32> to vector<2x128xf32>
    %70 = arith.addf %67, %69 : vector<2x128xf32>
    %71 = vector.extract_strided_slice %70 {offsets = [0, 127], sizes = [2, 1], strides = [1, 1]} : vector<2x128xf32> to vector<2x1xf32>
    %c0_20 = arith.constant 0 : index
    %c0_21 = arith.constant 0 : index
    %72 = vector.load %arg6[%c0_20, %c0_21] : memref<2x1xf32, #tpu.memory_space<vmem>>, vector<2x1xf32>
    tpu.vector_store %arg6[%c0_20, %c0_21], %71 {strides = array<i32>} : memref<2x1xf32, #tpu.memory_space<vmem>>, vector<2x1xf32>,
    %73 = vector.extract_strided_slice %70 {offsets = [0, 0], sizes = [1, 128], strides = [1, 1]} : vector<2x128xf32> to vector<1x128xf32>
    %74 = vector.extract_strided_slice %70 {offsets = [1, 0], sizes = [1, 128], strides = [1, 1]} : vector<2x128xf32> to vector<1x128xf32>
    %c1_i32_22 = arith.constant 1 : i32
    %75 = vector.broadcast %c1_i32_22 : i32 to vector<1x128xi32>
    %76 = arith.addi %11, %75 : vector<1x128xi32>
    %c128_i32 = arith.constant 128 : i32
    %77 = arith.muli %arg1, %c128_i32 : i32
    %78 = vector.broadcast %77 : i32 to vector<1x128xi32>
    %79 = arith.addi %76, %78 : vector<1x128xi32>
    %80 = arith.sitofp %79 : vector<1x128xi32> to vector<1x128xf32>
    %cst_23 = arith.constant 4.000000e+00 : f32
    %81 = vector.broadcast %cst_23 : f32 to vector<1x128xf32>
    %82 = arith.mulf %80, %81 : vector<1x128xf32>
    %cst_24 = arith.constant 1.000000e+00 : f32
    %83 = vector.broadcast %cst_24 : f32 to vector<1x128xf32>
    %84 = arith.divf %83, %82 : vector<1x128xf32>
    %85 = arith.mulf %73, %84 : vector<1x128xf32>
    %cst_25 = arith.constant 2.000000e+00 : f32
    %86 = vector.broadcast %cst_25 : f32 to vector<1x128xf32>
    %87 = arith.mulf %86, %85 : vector<1x128xf32>
    %88 = arith.mulf %87, %73 : vector<1x128xf32>
    %89 = arith.subf %74, %88 : vector<1x128xf32>
    %90 = arith.mulf %89, %84 : vector<1x128xf32>
    %91 = arith.mulf %85, %85 : vector<1x128xf32>
    %92 = arith.addf %90, %91 : vector<1x128xf32>
    %cst_26 = arith.constant 9.99999993E-9 : f32
    %93 = vector.broadcast %cst_26 : f32 to vector<1x128xf32>
    %94 = arith.addf %92, %93 : vector<1x128xf32>
    %95 = math.rsqrt %94 : vector<1x128xf32>
    %c0_27 = arith.constant 0 : index
    %c0_28 = arith.constant 0 : index
    %96 = vector.load %arg3[%c0_27, %c0_28] : memref<4x1xf32, #tpu.memory_space<vmem>>, vector<4x1xf32>
    %c0_29 = arith.constant 0 : index
    %c0_30 = arith.constant 0 : index
    %97 = vector.load %arg4[%c0_29, %c0_30] : memref<4x1xf32, #tpu.memory_space<vmem>>, vector<4x1xf32>
    %98 = vector.broadcast %85 : vector<1x128xf32> to vector<4x128xf32>
    %99 = arith.subf %4, %98 : vector<4x128xf32>
    %100 = vector.broadcast %95 : vector<1x128xf32> to vector<4x128xf32>
    %101 = arith.mulf %99, %100 : vector<4x128xf32>
    %102 = vector.broadcast %96 : vector<4x1xf32> to vector<4x128xf32>
    %103 = arith.mulf %101, %102 : vector<4x128xf32>
    %104 = vector.broadcast %97 : vector<4x1xf32> to vector<4x128xf32>
    %105 = arith.addf %103, %104 : vector<4x128xf32>
    %c0_31 = arith.constant 0 : index
    %c0_32 = arith.constant 0 : index
    %c0_33 = arith.constant 0 : index
    %106 = vector.load %arg5[%c0_31, %c0_32, %c0_33] : memref<1x4x128xf32, #tpu.memory_space<vmem>>, vector<1x4x128xf32>
    %107 = vector.shape_cast %106 : vector<1x4x128xf32> to vector<4x128xf32>
    %108 = vector.shape_cast %105 : vector<4x128xf32> to vector<1x4x128xf32>
    tpu.vector_store %arg5[%c0_31, %c0_32, %c0_33], %108 {strides = array<i32>} : memref<1x4x128xf32, #tpu.memory_space<vmem>>, vector<1x4x128xf32>,
    return
  }
  func.func @transform_0(%arg0: i32, %arg1: i32) -> (i32, i32, i32) {
    %c0_i32 = arith.constant 0 : i32
    %c0_i32_0 = arith.constant 0 : i32
    return %arg0, %c0_i32, %arg1 : i32, i32, i32
  }
  func.func @transform_1(%arg0: i32, %arg1: i32) -> (i32, i32) {
    %c0_i32 = arith.constant 0 : i32
    %c0_i32_0 = arith.constant 0 : i32
    %c0_i32_1 = arith.constant 0 : i32
    return %c0_i32, %c0_i32_0 : i32, i32
  }
  func.func @transform_2(%arg0: i32, %arg1: i32) -> (i32, i32) {
    %c0_i32 = arith.constant 0 : i32
    %c0_i32_0 = arith.constant 0 : i32
    %c0_i32_1 = arith.constant 0 : i32
    return %c0_i32, %c0_i32_0 : i32, i32
  }
  func.func @transform_3(%arg0: i32, %arg1: i32) -> (i32, i32, i32) {
    %c0_i32 = arith.constant 0 : i32
    %c0_i32_0 = arith.constant 0 : i32
    return %arg0, %c0_i32, %arg1 : i32, i32, i32
  }
}

</mosaic_0001>

<bundles_post_ra>
// kernel: tpu_custom_call.1
= control target key start
LH: loop header
LB: loop body
LE: loop exit
PB: predicated region body
PF: predicated region fallthrough
CT: control target
= control target key end

     0   :  { %8 = vsyncpa [#allocation4], 0  ;;  %s720_s0 = inlined_call_operand.vmem [shape: f32[2,4,128], index: 0, kind: input, shape index: {}]   ;;  %s721_s1 = inlined_call_operand.vmem [shape: f32[4,1], index: 1, kind: input, shape index: {}]   ;;  %s722_s2 = inlined_call_operand.vmem [shape: f32[4,1], index: 2, kind: input, shape index: {}]   ;;  %s723_s3 = inlined_call_operand.hbm [shape: f32[2,4,128], index: 3, kind: output, shape index: {}]  }
   0x1   :  { %10 = vsyncpa [#allocation4 + $0x1], 0  ;;  %s603_s12 = smov 0   ;;  %s605_s13 = smov 0  }
   0x2   :  { %s607_s14 = smov 0   ;;  %s609_s15 = smov 0  }
   0x3   :  { %s611_s16 = smov 0   ;;  %s613_s17 = smov 0  }
   0x4 LB: > { %s414_s18 = sadd.s32 4294967295, %s571_s17   ;;  %s415_s19 = sadd.s32 4294967294, %s571_s17   ;;  %s571_s17 = sphi %s613_s17, %s16_s17   ;;  %s567_s16 = sphi %s611_s16, %s730_s16   ;;  %s563_s15 = sphi %s609_s15, %s729_s15   ;;  %s559_s14 = sphi %s607_s14, %s728_s14   ;;  %s555_s13 = sphi %s605_s13, %s727_s13   ;;  %s551_s12 = sphi %s603_s12, %s726_s12  }
   0x5   : > { %s28_s20 = sadd.s32 1, %s567_s16  ;;  %s107_s21 = sadd.s32 1, %s559_s14 }
   0x6   : > { %p30_p0 = scmp.ge.s32.totalorder %s28_s20, 2  ;;  %p117_p1 = scmp.ne.s32.totalorder %s559_s14, %s555_s13 }
   0x7   : > { %p118_p2 = scmp.eq.s32.totalorder %s414_s18, 1  ;;  %p123_p3 = scmp.ne.s32.totalorder %s555_s13, %s551_s12 }
   0x8   : > { %s732_s20 = smov (%p30_p0, %s28_s20), 0  ;;  %p124_p5 = scmp.eq.s32.totalorder %s415_s19, 1 }
   0x9   : > { %p643_p4 = por %p118_p2, %p117_p1  ;;  %s102_s23 = ssub.s32 %s567_s16, %s732_s20 }
   0xa   : > { %p418_p6 = scmp.ge.s32.totalorder %s571_s17, 1  ;;  %p105_p7 = scmp.eq.s32.totalorder %s102_s23, 0 }
   0xb   : > { %p650_p8 = por %p124_p5, %p123_p3  ;;  %p158_p9 = scmp.lt.s32.totalorder %s571_s17, 3 }
   0xc   : > { %s656_s25 = scalar_select %p105_p7, %s559_s14, %s107_s21  }
   0xd   : > { %p159_p10 = pnand %p418_p6, %p158_p9 }
   0xe   : > { %p184_p11 = scmp.lt.s32.totalorder (!%p159_p10), %s563_s15, 1  ;;  %s573_s4 = smov (!%p159_p10), 1  }
   0xf   : > { %162 = sbr.rel (%p159_p10) target bundleno = 985 (0x3d9), region = 32  ;;  %s574_s5 = smov (!%p159_p10), 2  }
  0x10   : > { %s575_s6 = smov (!%p159_p10), 4   ;;  %s576_s7 = smov (!%p159_p10), 8  }
  0x11   : > { %s579_s8 = smov (!%p159_p10), 16   ;;  %s580_s11 = smov (!%p159_p10), 32  }
  0x12   : > { %s581_s18 = smov (!%p159_p10), 64   ;;  %s181_s23 = sand.u32 (!%p159_p10), 1, %s555_s13  }
  0x14   : > { %s185_s26 = scalar_select %p184_p11, %s563_s15, 1  ;;  %vm198_vm0 = vcmask 1043456   ;;  %vm214_vm1 = vcmask 1040384   ;;  %v216_v17 = vlaneseq  ;;  %vm195_vm5 = vcmask 1024   ;;  %v304_v34 = vld [vmem:[%s722_s2] sm:$0xf] }
  0x15   : > { %v577_v28 = vmov 0   ;;  %v578_v29 = vmov 0.0   ;;  %v303_v41 = vld [vmem:[%s721_s1] sm:$0xf] }
  0x16   : > { %s420_s27 = sshll.u32 %s185_s26, 2  ;;  %v217_v18 = vand.u32 127, %v216_v17  ;;  %489 = vset.pattern.permute.xlu0 %v577_v28  ;;  %196 = vst.msk [vmem:[#allocation2] sm:$0x3] %vm195_vm5, %v578_v29  ;;  %490 = vset.pattern.permute.xlu1 %v577_v28  ;;  %v306_v61 = vshrl.u32 %v216_v17, 7  ;;  %s419_s26 = sshll.u32 %s181_s23, 2 }
  0x17   : > { %s190_s30 = scalar_lea.vmem %s720_s0, %s420_s27  ;;  %s422_s27 = sshll.u32 %s563_s15, 6 }
  0x18   : > { %v663_v0 = vld [vmem:[%s190_s30] sm:$0xf]  ;;  %vm220_vm2 = vcmp.ge.s32.totalorder %v217_v18, 1  ;;  %vm227_vm3 = vcmp.ge.s32.totalorder %v217_v18, 2  ;;  %vm234_vm4 = vcmp.ge.s32.totalorder %v217_v18, 4  ;;  %vm241_vm6 = vcmp.ge.s32.totalorder %v217_v18, 8 }
  0x19   : > { %v199_v1 = vsel %vm198_vm0, %v663_v0, 0.0  ;;  %v206_v2 = vmul.f32 %v663_v0, %v663_v0  ;;  %vm248_vm7 = vcmp.ge.s32.totalorder %v217_v18, 16  ;;  %vm255_vm8 = vcmp.ge.s32.totalorder %v217_v18, 32  ;;  %s183_s28 = scalar_lea.vmem [#allocation3], %s419_s26 }
  0x1a   : > { %v200_v3 = vrot.slane %v199_v1, 4  ;;  %v280_v42 = vadd.s32 1, %v217_v18  ;;  %vm262_vm9 = vcmp.ge.s32.totalorder %v217_v18, 64  ;;  %v307_v62 = vsub.s32 0, %v306_v61  ;;  %s343_s29 = sshll.u32 %s183_s28, 4  ;;  %s344_s29 = int_to_ptr.vmem [resolvable:$true] %s343_s29 }
  0x1b   : > { %v207_v4 = vsel %vm198_vm0, %v206_v2, 0.0  ;;  %v312_v63 = vsub.s32 1, %v306_v61 }
  0x1c   : > { %v201_v5 = vadd.f32 %v200_v3, %v199_v1  ;;  %v208_v6 = vrot.slane %v207_v4, 4  ;;  %v284_v43 = vcvt.s32.f32 %v280_v42 }
  0x1d   : > { %v267_v33 = vld [vmem:[#allocation2] sm:$0x3] }
  0x1e   : > { %v202_v7 = vrot.slane %v201_v5, 2  ;;  %v209_v8 = vadd.f32 %v208_v6, %v207_v4  ;;  %v285_v44 = vmul.f32 4.0, %v284_v43 }
  0x20   : > { %v203_v9 = vadd.f32 %v202_v7, %v201_v5  ;;  %v210_v10 = vrot.slane %v209_v8, 2  ;;  %491 = vrcp.f32 %v285_v44 }
  0x22   : > { %v204_v11 = vrot.slane %v203_v9, 1  ;;  %v211_v12 = vadd.f32 %v210_v10, %v209_v8 }
  0x24   : > { %v205_v13 = vadd.f32 %v204_v11, %v203_v9  ;;  %v212_v14 = vrot.slane %v211_v12, 1 }
  0x26   : > { %v213_v15 = vadd.f32 %v212_v14, %v211_v12 }
  0x28   : > { %v215_v16 = vsel %vm214_vm1, %v205_v13, %v213_v15 }
  0x29   : > { %218 = vrot.lane.b32.xlu0 %v215_v16, %s573_s4 }
  0x2d   : > { %v492_v48 = vpop.eup %491 }
  0x9b   : > { %v219_v19 = vpop.permute.xlu0 %218 }
  0x9c   : > { %v223_v20 = vsel %vm220_vm2, %v219_v19, 0.0 }
  0x9d   : > { %v224_v21 = vadd.f32 %v223_v20, %v215_v16 }
  0x9f   : > { %225 = vrot.lane.b32.xlu0 %v224_v21, %s574_s5  ;;  %s341_s5 = scalar_lea.hbm %s723_s3, %s422_s27 }
 0x111   : > { %v226_v22 = vpop.permute.xlu0 %225 }
 0x112   : > { %v230_v23 = vsel %vm227_vm3, %v226_v22, 0.0 }
 0x113   : > { %v231_v24 = vadd.f32 %v230_v23, %v224_v21 }
 0x115   : > { %232 = vrot.lane.b32.xlu1 %v231_v24, %s575_s6  ;;  %s329_s6 = scalar_lea.sflag [#allocation4], %s181_s23 }
 0x187   : > { %v233_v25 = vpop.permute.xlu1 %232 }
 0x188   : > { %v237_v26 = vsel %vm234_vm4, %v233_v25, 0.0 }
 0x189   : > { %v238_v27 = vadd.f32 %v237_v26, %v231_v24 }
 0x18b   : > { %239 = vrot.lane.b32.xlu1 %v238_v27, %s576_s7  ;;  %s495_s7 = scalar_lea.vmem %s344_s29, 64 }
 0x18c   : > { %p496_p12 = scmp.ne.s32.totalorder %s344_s29, %s495_s7 }
 0x18e   : > { %p497_p13 = pnand %p496_p12, %p643_p4 }
 0x190   : > { %p498_p0 = pneg %p497_p13 }
 0x1fd   : > { %v240_v30 = vpop.permute.xlu1 %239 }
 0x1fe   : > { %v244_v31 = vsel %vm241_vm6, %v240_v30, 0.0 }
 0x1ff   : > { %v245_v32 = vadd.f32 %v244_v31, %v238_v27 }
 0x201   : > { %246 = vrot.lane.b32.xlu0 %v245_v32, %s579_s8  ;;  %s582_s8 = smov [#allocation3]  }
 0x202   : > { %s499_s9 = sshll.u32 %s582_s8, 4  ;;  %s500_s9 = int_to_ptr.vmem [resolvable:$false] %s499_s9 }
 0x203   : > { %s501_s15 = scalar_lea.vmem %s500_s9, 128  ;;  %p502_p1 = scmp.lt.s32.totalorder %s344_s29, %s500_s9 }
 0x204   : > { %p503_p2 = scmp.lt.s32.totalorder %s501_s15, %s495_s7 }
 0x205   : > { %270 = vperm.xlu0 %489, %v267_v33  }
 0x206   : > { %p504_p3 = por %p503_p2, %p502_p1 }
 0x208   : > { %p505_p5 = pnand %p504_p3, %p498_p0 }
 0x209   : > { %323 = vperm.xlu0 %489, %v304_v34  }
 0x273   : > { %v247_v35 = vpop.permute.xlu0 %246 }
 0x274   : > { %v251_v36 = vsel %vm248_vm7, %v247_v35, 0.0 }
 0x275   : > { %v252_v37 = vadd.f32 %v251_v36, %v245_v32 }
 0x277   : > { %253 = vrot.lane.b32.xlu1 %v252_v37, %s580_s11 }
 0x280   : > { %v271_v49 = vpop.permute.xlu0 %270 }
 0x284   : > { %v324_v8 = vpop.permute.xlu0 %323 }
 0x2e9   : > { %v254_v38 = vpop.permute.xlu1 %253 }
 0x2ea   : > { %v258_v39 = vsel %vm255_vm8, %v254_v38, 0.0 }
 0x2eb   : > { %v259_v40 = vadd.f32 %v258_v39, %v252_v37 }
 0x2ed   : > { %260 = vrot.lane.b32.xlu1 %v259_v40, %s581_s18 }
 0x2f1   : > { %317 = vperm.xlu1 %490, %v303_v41  }
 0x35f   : > { %v261_v45 = vpop.permute.xlu1 %260 }
 0x360   : > { %v265_v46 = vsel %vm262_vm9, %v261_v45, 0.0 }
 0x361   : > { %v266_v47 = vadd.f32 %v265_v46, %v259_v40 }
 0x363   : > { %v273_v50 = vadd.f32 %v271_v49, %v266_v47 }
 0x365   : > { %275 = vrot.lane.b32.xlu1 %v273_v50, %s573_s4  ;;  %v288_v51 = vmul.f32 %v492_v48, %v273_v50 }
 0x367   : > { %v289_v52 = vmul.f32 2.0, %v288_v51  ;;  %v296_v55 = vmul.f32 %v288_v51, %v288_v51  ;;  %v308_v1 = vrot.slane %v288_v51, %v307_v62 }
 0x369   : > { %v290_v53 = vmul.f32 %v289_v52, %v273_v50  ;;  %v298_v58 = vrot.slane %v296_v55, 7  ;;  %v309_v3 = vsub.f32 %v663_v0, %v308_v1 }
 0x36b   : > { %v292_v54 = vrot.slane %v290_v53, 7 }
 0x36c   : > { %v318_v5 = vpop.permute.xlu1 %317 }
 0x36d   : > { %v294_v56 = vsub.f32 %v273_v50, %v292_v54 }
 0x36f   : > { %v295_v57 = vmul.f32 %v492_v48, %v294_v56 }
 0x371   : > { %v300_v59 = vadd.f32 %v298_v58, %v295_v57 }
 0x373   : > { %v301_v60 = vadd.f32 1e-08, %v300_v59 }
 0x375   : > { %493 = vrsqrt.f32 %v301_v60 }
 0x382   : > { %v494_v2 = vpop.eup %493 }
 0x383   : > { %v313_v4 = vrot.slane %v494_v2, %v312_v63 }
 0x385   : > { %v314_v6 = vmul.f32 %v313_v4, %v309_v3 }
 0x387   : > { %v320_v7 = vmul.f32 %v318_v5, %v314_v6 }
 0x389   : > { %v326_v9 = vadd.f32 %v324_v8, %v320_v7 }
 0x38b   : > { %327 = vst [vmem:[%s183_s28] sm:$0xf] %v326_v9 }
 0x38c   : > { %508 = shalt.err (!%p505_p5)
}
 0x38d   : > { %s509_s10 = scalar_lea.hbm %s341_s5, 64  ;;  %s513_s19 = scalar_lea.hbm %s723_s3, 128 }
 0x38e   : > { %p510_p6 = scmp.ne.s32.totalorder %s341_s5, %s509_s10  ;;  %p514_p10 = scmp.lt.s32.totalorder %s341_s5, %s723_s3 }
 0x38f   : > { %p515_p11 = scmp.lt.s32.totalorder %s513_s19, %s509_s10 }
 0x390   : > { %p511_p7 = pnand %p510_p6, %p643_p4 }
 0x391   : > { %p516_p12 = por %p515_p11, %p514_p10 }
 0x392   : > { %p512_p9 = pneg %p511_p7 }
 0x394   : > { %p517_p13 = pnand %p516_p12, %p512_p9 }
 0x396   : > { %520 = shalt.err (!%p517_p13)
}
 0x397   : > { %425 = dma.vmem_to_hbm [thread:$0]  (%p643_p4), %s344_s29, 64, %s341_s5, %s329_s6  }
 0x3d7   : > { %v276_v0 = vpop.permute.xlu1 %275 }
 0x3d8   : > { %279 = vst.msk [vmem:[#allocation2] sm:$0x3] %vm195_vm5, %v276_v0 }
 0x3d9 PF: > { %p431_p0 = scmp.ge.s32.totalorder %s571_s17, 2  ;;  %s355_s26 = sand.u32 1, %s551_s12  }
 0x3da   : > { %s356_s27 = scalar_lea.sflag [#allocation4], %s355_s26 }
 0x3db   : > { %p428_p1 = pnand %p431_p0, %p650_p8 }
 0x3dd   : > { %p429_p2 = pneg %p428_p1 }
 0x3df   : > { %546 = dma.done.wait (%p429_p2), %s356_s27, 64  }
 0x3e0   : > { %548 = vsyncadd (%p429_p2), %s356_s27, 4294967232  ;;  %s16_s17 = sadd.s32 1, %s571_s17   ;;  %s726_s12 = smov %s555_s13 }
 0x3e1   : > { %p13_p3 = scmp.ge.s32.totalorder %s16_s17, 4   ;;  %s727_s13 = smov %s559_s14 }
 0x3e2   : > { %s728_s14 = smov %s656_s25  ;;  %s729_s15 = smov %s567_s16 }
 0x3e3   : > { %s730_s16 = smov %s732_s20  ;;  %15 = sbr.rel (!%p13_p3) target bundleno = 4 (0x4), region = 71 }
 0x3e8   :  { %361 = vsyncpa [#allocation4], 1 }
 0x3e9   :  { %363 = vsyncpa [#allocation4 + $0x1], 1 }

</bundles_post_ra>
